<compile_context>
chip_gen: v7x
topology: tpu7x:2x2x1
jax: 0.10.0
libtpu: 0.0.40
codegen_flags: <defaults>
</compile_context>

<pallas_src>
import functools

import jax
import jax.numpy as jnp
from jax.experimental import pallas as pl
from jax.experimental.pallas import tpu as pltpu


def _dc_ce_partial_kernel(x_ref, t_ref, inter_ref, union_ref, bce_ref,
                          acc_inter, acc_union, acc_bce, *,
                          hw, tn, needs_mask):
    """Accumulate per-class partial sums over the spatial-tile axis of one batch."""
    smooth = 1e-5
    j = pl.program_id(1)
    is_first_tile = j == 0
    is_last_tile = j == pl.num_programs(1) - 1

    @pl.when(is_first_tile)
    def _():
        acc_inter[...] = jnp.zeros_like(acc_inter)
        acc_union[...] = jnp.zeros_like(acc_union)
        acc_bce[...] = jnp.zeros_like(acc_bce)

    # (C, TN) tile; upcast (supports bf16 inputs, f32 accumulation).
    p = x_ref[...].astype(jnp.float32)
    t = t_ref[...].astype(jnp.float32)

    if needs_mask:
        col = jax.lax.broadcasted_iota(jnp.int32, p.shape, 1)
        valid = (col + j * tn) < hw
        p = jnp.where(valid, p, 0.5)   # keep logs finite on padded lanes
        t = jnp.where(valid, t, 0.0)

    # Dice terms: clamp pred to [smooth, 1-smooth] (matches the torch module).
    pc = jnp.clip(p, smooth, 1.0 - smooth)

    # BCE (torch.nn.BCELoss semantics: log clamped at -100, mean taken later).
    # Two-log form kept deliberately so soft (non-binary) targets stay correct.
    logp = jnp.maximum(jnp.log(p), -100.0)
    log1mp = jnp.maximum(jnp.log(1.0 - p), -100.0)
    bce = -(t * logp + (1.0 - t) * log1mp)

    if needs_mask:
        pc = jnp.where(valid, pc, 0.0)
        bce = jnp.where(valid, bce, 0.0)

    # Lane-wise (VPU-only) accumulation; cross-lane reduce deferred to epilogue.
    acc_inter[...] += pc * t
    acc_union[...] += pc + t
    acc_bce[...] += bce

    @pl.when(is_last_tile)
    def _():
        inter = jnp.sum(acc_inter[...], axis=1, keepdims=True)   # (C, 1)
        union = jnp.sum(acc_union[...], axis=1, keepdims=True)   # (C, 1)
        bce_s = jnp.sum(acc_bce[...], axis=1, keepdims=True)     # (C, 1)
        # One unmasked lane-dense store per output per batch, written once.
        inter_ref[...] = jnp.broadcast_to(inter, inter_ref.shape)
        union_ref[...] = jnp.broadcast_to(union, union_ref.shape)
        bce_ref[...] = jnp.broadcast_to(bce_s, bce_ref.shape)


def dc_and_ce_loss(net_output, target, *, w_dc=None, w_ce=None,
                   weight_ce=1.0, weight_dice=1.0):
    """Returns (result, dc_loss, ce_loss) matching DC_and_CE_loss.forward (ours=False)."""
    assert net_output.shape == target.shape, "predict & target shape do not match"
    B, C, H, W = net_output.shape
    HW = H * W
    N = B * HW
    smooth = 1e-5

    # Free contiguous view (no transpose -> no extra HBM copy).
    x = net_output.reshape(B, C, HW)
    t = target.reshape(B, C, HW)

    # Tile size along the flattened spatial (lane) axis.
    # VMEM per lane-column: 2 inputs x double-buffer + 3 f32 accumulators.
    budget_bytes = 8 * 1024 * 1024
    bytes_per_col = (2 * 2 + 3) * C * 4
    tn = max(128, min(32768, (budget_bytes // bytes_per_col) // 128 * 128))
    if HW <= tn:
        tn = HW                      # block == full dim, no tail masking needed
        needs_mask = False
    else:
        needs_mask = (HW % tn) != 0  # mask only if there is a ragged tail
    num_tiles = pl.cdiv(HW, tn)

    kernel = functools.partial(
        _dc_ce_partial_kernel, hw=HW, tn=tn, needs_mask=needs_mask)

    lane_out = 128
    out_shape = tuple(jax.ShapeDtypeStruct((B, C, lane_out), jnp.float32)
                      for _ in range(3))
    out_spec = pl.BlockSpec((None, C, lane_out), lambda b, j: (b, 0, 0))

    inter_out, union_out, bce_out = pl.pallas_call(
        kernel,
        out_shape=out_shape,
        grid=(B, num_tiles),
        in_specs=[
            pl.BlockSpec((None, C, tn), lambda b, j: (b, 0, j)),
            pl.BlockSpec((None, C, tn), lambda b, j: (b, 0, j)),
        ],
        out_specs=(out_spec, out_spec, out_spec),
        scratch_shapes=[
            pltpu.VMEM((C, tn), jnp.float32),
            pltpu.VMEM((C, tn), jnp.float32),
            pltpu.VMEM((C, tn), jnp.float32),
        ],
        compiler_params=pltpu.CompilerParams(
            dimension_semantics=("parallel", "arbitrary")),
    )(x, t)

    # Tiny finalize on (B, C) scalars: sum partials over batch, then dice/BCE.
    inter = jnp.sum(inter_out[:, :, 0], axis=0)   # (C,)
    union = jnp.sum(union_out[:, :, 0], axis=0)   # (C,)
    bce_s = jnp.sum(bce_out[:, :, 0], axis=0)     # (C,)

    dice_cls = 1.0 - 2.0 * (inter + smooth) / (union + smooth)
    bce_cls = bce_s / N

    wdc = jnp.asarray(w_dc if w_dc is not None else [1.0] * C, dtype=jnp.float32)
    wce = jnp.asarray(w_ce if w_ce is not None else [1.0] * C, dtype=jnp.float32)
    dc_loss = jnp.sum(dice_cls * wdc) / C
    ce_loss = jnp.sum(bce_cls * wce) / C
    result = weight_ce * ce_loss + weight_dice * dc_loss
    return result, dc_loss, ce_loss


def _reference(net_output, target, w_dc, w_ce, weight_ce=1.0, weight_dice=1.0):
    """Plain-JAX reference mirroring the PyTorch module, for a sanity check."""
    smooth = 1e-5
    C = net_output.shape[1]
    dc_total = 0.0
    ce_total = 0.0
    for i in range(C):
        p = net_output[:, i].astype(jnp.float32)
        t = target[:, i].astype(jnp.float32)
        pc = jnp.clip(p, smooth, 1.0 - smooth)
        inter = jnp.sum(pc * t)
        union = jnp.sum(pc) + jnp.sum(t)
        dc_total += (1.0 - 2.0 * (inter + smooth) / (union + smooth)) * w_dc[i]
        logp = jnp.maximum(jnp.log(p), -100.0)
        log1mp = jnp.maximum(jnp.log(1.0 - p), -100.0)
        ce_total += jnp.mean(-(t * logp + (1.0 - t) * log1mp)) * w_ce[i]
    dc_loss = dc_total / C
    ce_loss = ce_total / C
    return weight_ce * ce_loss + weight_dice * dc_loss, dc_loss, ce_loss


if __name__ == "__main__":
    key = jax.random.PRNGKey(0)
    k1, k2 = jax.random.split(key)

    B, C, H, W = 2, 4, 16, 16
    # net_output: probabilities (softmax over class axis), as BCE/Dice expect.
    logits = jax.random.normal(k1, (B, C, H, W), dtype=jnp.float32)
    net_output = jax.nn.softmax(logits, axis=1)
    # target: one-hot over class axis, same shape as net_output.
    labels = jax.random.randint(k2, (B, H, W), 0, C)
    target = jnp.transpose(jax.nn.one_hot(labels, C, dtype=jnp.float32),
                           (0, 3, 1, 2))

    result, dc_loss, ce_loss = jax.block_until_ready(
        dc_and_ce_loss(net_output, target))

    # sanity check against the plain-JAX reference of the PyTorch module
    w = [1.0] * C
    ref_result, ref_dc, ref_ce = _reference(net_output, target, w, w)
    assert jnp.allclose(result, ref_result, rtol=1e-5, atol=1e-6), (result, ref_result)
    assert jnp.allclose(dc_loss, ref_dc, rtol=1e-5, atol=1e-6), (dc_loss, ref_dc)
    assert jnp.allclose(ce_loss, ref_ce, rtol=1e-5, atol=1e-6), (ce_loss, ref_ce)

    print("KERNEL_OK")
</pallas_src>

<mosaic_0001>
module attributes {stable_mosaic.version = 11 : i64} {
  func.func @_dc_ce_partial_kernel(%arg0: i32, %arg1: i32, %arg2: memref<1x4x256xf32, #tpu.memory_space<vmem>>, %arg3: memref<1x4x256xf32, #tpu.memory_space<vmem>>, %arg4: memref<1x4x128xf32, #tpu.memory_space<vmem>>, %arg5: memref<1x4x128xf32, #tpu.memory_space<vmem>>, %arg6: memref<1x4x128xf32, #tpu.memory_space<vmem>>, %arg7: memref<4x256xf32, #tpu.memory_space<vmem>>, %arg8: memref<4x256xf32, #tpu.memory_space<vmem>>, %arg9: memref<4x256xf32, #tpu.memory_space<vmem>>) attributes {dimension_semantics = [#tpu.dimension_semantics<parallel>, #tpu.dimension_semantics<arbitrary>], iteration_bounds = array<i64: 2, 1>, scalar_prefetch = 0 : i64, scratch_operands = 3 : i64, tpu.core_type = #tpu.core_type<tc>, window_params = [{transform_indices = @transform_0, window_bounds = array<i64: 1, 4, 256>}, {transform_indices = @transform_1, window_bounds = array<i64: 1, 4, 256>}, {transform_indices = @transform_2, window_bounds = array<i64: 1, 4, 128>}, {transform_indices = @transform_3, window_bounds = array<i64: 1, 4, 128>}, {transform_indices = @transform_4, window_bounds = array<i64: 1, 4, 128>}]} {
    %c0_i32 = arith.constant 0 : i32
    %0 = arith.cmpi eq, %arg1, %c0_i32 : i32
    %c0_i32_0 = arith.constant 0 : i32
    %1 = arith.cmpi eq, %arg1, %c0_i32_0 : i32
    %2 = arith.extui %0 : i1 to i32
    %c0_i32_1 = arith.constant 0 : i32
    %3 = arith.cmpi ne, %2, %c0_i32_1 : i32
    scf.if %3 {
      %cst_26 = arith.constant 0.000000e+00 : f32
      %40 = vector.broadcast %cst_26 : f32 to vector<4x256xf32>
      %c0_27 = arith.constant 0 : index
      %c0_28 = arith.constant 0 : index
      %41 = vector.load %arg7[%c0_27, %c0_28] : memref<4x256xf32, #tpu.memory_space<vmem>>, vector<4x256xf32>
      tpu.vector_store %arg7[%c0_27, %c0_28], %40 {strides = array<i32>} : memref<4x256xf32, #tpu.memory_space<vmem>>, vector<4x256xf32>,
      %cst_29 = arith.constant 0.000000e+00 : f32
      %42 = vector.broadcast %cst_29 : f32 to vector<4x256xf32>
      %c0_30 = arith.constant 0 : index
      %c0_31 = arith.constant 0 : index
      %43 = vector.load %arg8[%c0_30, %c0_31] : memref<4x256xf32, #tpu.memory_space<vmem>>, vector<4x256xf32>
      tpu.vector_store %arg8[%c0_30, %c0_31], %42 {strides = array<i32>} : memref<4x256xf32, #tpu.memory_space<vmem>>, vector<4x256xf32>,
      %cst_32 = arith.constant 0.000000e+00 : f32
      %44 = vector.broadcast %cst_32 : f32 to vector<4x256xf32>
      %c0_33 = arith.constant 0 : index
      %c0_34 = arith.constant 0 : index
      %45 = vector.load %arg9[%c0_33, %c0_34] : memref<4x256xf32, #tpu.memory_space<vmem>>, vector<4x256xf32>
      tpu.vector_store %arg9[%c0_33, %c0_34], %44 {strides = array<i32>} : memref<4x256xf32, #tpu.memory_space<vmem>>, vector<4x256xf32>,
    } else {
    }
    %c0 = arith.constant 0 : index
    %c0_2 = arith.constant 0 : index
    %c0_3 = arith.constant 0 : index
    %4 = vector.load %arg2[%c0, %c0_2, %c0_3] : memref<1x4x256xf32, #tpu.memory_space<vmem>>, vector<1x4x256xf32>
    %5 = vector.shape_cast %4 : vector<1x4x256xf32> to vector<4x256xf32>
    %c0_4 = arith.constant 0 : index
    %c0_5 = arith.constant 0 : index
    %c0_6 = arith.constant 0 : index
    %6 = vector.load %arg3[%c0_4, %c0_5, %c0_6] : memref<1x4x256xf32, #tpu.memory_space<vmem>>, vector<1x4x256xf32>
    %7 = vector.shape_cast %6 : vector<1x4x256xf32> to vector<4x256xf32>
    %cst = arith.constant 9.99999974E-6 : f32
    %cst_7 = arith.constant 0.999989986 : f32
    %8 = vector.broadcast %cst : f32 to vector<4x256xf32>
    %9 = arith.maximumf %8, %5 : vector<4x256xf32>
    %10 = vector.broadcast %cst_7 : f32 to vector<4x256xf32>
    %11 = arith.minimumf %10, %9 : vector<4x256xf32>
    %12 = math.log %5 : vector<4x256xf32>
    %cst_8 = arith.constant -1.000000e+02 : f32
    %13 = vector.broadcast %cst_8 : f32 to vector<4x256xf32>
    %14 = arith.maximumf %12, %13 : vector<4x256xf32>
    %cst_9 = arith.constant 1.000000e+00 : f32
    %15 = vector.broadcast %cst_9 : f32 to vector<4x256xf32>
    %16 = arith.subf %15, %5 : vector<4x256xf32>
    %17 = math.log %16 : vector<4x256xf32>
    %cst_10 = arith.constant -1.000000e+02 : f32
    %18 = vector.broadcast %cst_10 : f32 to vector<4x256xf32>
    %19 = arith.maximumf %17, %18 : vector<4x256xf32>
    %20 = arith.mulf %7, %14 : vector<4x256xf32>
    %cst_11 = arith.constant 1.000000e+00 : f32
    %21 = vector.broadcast %cst_11 : f32 to vector<4x256xf32>
    %22 = arith.subf %21, %7 : vector<4x256xf32>
    %23 = arith.mulf %22, %19 : vector<4x256xf32>
    %24 = arith.addf %20, %23 : vector<4x256xf32>
    %cst_12 = arith.constant 0.000000e+00 : f32
    %25 = vector.broadcast %cst_12 : f32 to vector<4x256xf32>
    %26 = arith.subf %25, %24 : vector<4x256xf32>
    %c0_13 = arith.constant 0 : index
    %c0_14 = arith.constant 0 : index
    %27 = vector.load %arg7[%c0_13, %c0_14] : memref<4x256xf32, #tpu.memory_space<vmem>>, vector<4x256xf32>
    %28 = arith.mulf %11, %7 : vector<4x256xf32>
    %29 = arith.addf %27, %28 : vector<4x256xf32>
    %c0_15 = arith.constant 0 : index
    %c0_16 = arith.constant 0 : index
    %30 = vector.load %arg7[%c0_15, %c0_16] : memref<4x256xf32, #tpu.memory_space<vmem>>, vector<4x256xf32>
    tpu.vector_store %arg7[%c0_15, %c0_16], %29 {strides = array<i32>} : memref<4x256xf32, #tpu.memory_space<vmem>>, vector<4x256xf32>,
    %c0_17 = arith.constant 0 : index
    %c0_18 = arith.constant 0 : index
    %31 = vector.load %arg8[%c0_17, %c0_18] : memref<4x256xf32, #tpu.memory_space<vmem>>, vector<4x256xf32>
    %32 = arith.addf %11, %7 : vector<4x256xf32>
    %33 = arith.addf %31, %32 : vector<4x256xf32>
    %c0_19 = arith.constant 0 : index
    %c0_20 = arith.constant 0 : index
    %34 = vector.load %arg8[%c0_19, %c0_20] : memref<4x256xf32, #tpu.memory_space<vmem>>, vector<4x256xf32>
    tpu.vector_store %arg8[%c0_19, %c0_20], %33 {strides = array<i32>} : memref<4x256xf32, #tpu.memory_space<vmem>>, vector<4x256xf32>,
    %c0_21 = arith.constant 0 : index
    %c0_22 = arith.constant 0 : index
    %35 = vector.load %arg9[%c0_21, %c0_22] : memref<4x256xf32, #tpu.memory_space<vmem>>, vector<4x256xf32>
    %36 = arith.addf %35, %26 : vector<4x256xf32>
    %c0_23 = arith.constant 0 : index
    %c0_24 = arith.constant 0 : index
    %37 = vector.load %arg9[%c0_23, %c0_24] : memref<4x256xf32, #tpu.memory_space<vmem>>, vector<4x256xf32>
    tpu.vector_store %arg9[%c0_23, %c0_24], %36 {strides = array<i32>} : memref<4x256xf32, #tpu.memory_space<vmem>>, vector<4x256xf32>,
    %38 = arith.extui %1 : i1 to i32
    %c0_i32_25 = arith.constant 0 : i32
    %39 = arith.cmpi ne, %38, %c0_i32_25 : i32
    scf.if %39 {
      %c0_26 = arith.constant 0 : index
      %c0_27 = arith.constant 0 : index
      %40 = vector.load %arg7[%c0_26, %c0_27] : memref<4x256xf32, #tpu.memory_space<vmem>>, vector<4x256xf32>
      %cst_28 = arith.constant dense<0.000000e+00> : vector<4xf32>
      %41 = vector.multi_reduction <add>, %40, %cst_28 [1] : vector<4x256xf32> to vector<4xf32>
      %42 = vector.shape_cast %41 : vector<4xf32> to vector<4x1xf32>
      %c0_29 = arith.constant 0 : index
      %c0_30 = arith.constant 0 : index
      %43 = vector.load %arg8[%c0_29, %c0_30] : memref<4x256xf32, #tpu.memory_space<vmem>>, vector<4x256xf32>
      %cst_31 = arith.constant dense<0.000000e+00> : vector<4xf32>
      %44 = vector.multi_reduction <add>, %43, %cst_31 [1] : vector<4x256xf32> to vector<4xf32>
      %45 = vector.shape_cast %44 : vector<4xf32> to vector<4x1xf32>
      %c0_32 = arith.constant 0 : index
      %c0_33 = arith.constant 0 : index
      %46 = vector.load %arg9[%c0_32, %c0_33] : memref<4x256xf32, #tpu.memory_space<vmem>>, vector<4x256xf32>
      %cst_34 = arith.constant dense<0.000000e+00> : vector<4xf32>
      %47 = vector.multi_reduction <add>, %46, %cst_34 [1] : vector<4x256xf32> to vector<4xf32>
      %48 = vector.shape_cast %47 : vector<4xf32> to vector<4x1xf32>
      %49 = vector.shape_cast %42 : vector<4x1xf32> to vector<4x1xf32>
      %50 = vector.broadcast %49 : vector<4x1xf32> to vector<4x128xf32>
      %c0_35 = arith.constant 0 : index
      %c0_36 = arith.constant 0 : index
      %c0_37 = arith.constant 0 : index
      %51 = vector.load %arg4[%c0_35, %c0_36, %c0_37] : memref<1x4x128xf32, #tpu.memory_space<vmem>>, vector<1x4x128xf32>
      %52 = vector.shape_cast %51 : vector<1x4x128xf32> to vector<4x128xf32>
      %53 = vector.shape_cast %50 : vector<4x128xf32> to vector<1x4x128xf32>
      tpu.vector_store %arg4[%c0_35, %c0_36, %c0_37], %53 {strides = array<i32>} : memref<1x4x128xf32, #tpu.memory_space<vmem>>, vector<1x4x128xf32>,
      %54 = vector.shape_cast %45 : vector<4x1xf32> to vector<4x1xf32>
      %55 = vector.broadcast %54 : vector<4x1xf32> to vector<4x128xf32>
      %c0_38 = arith.constant 0 : index
      %c0_39 = arith.constant 0 : index
      %c0_40 = arith.constant 0 : index
      %56 = vector.load %arg5[%c0_38, %c0_39, %c0_40] : memref<1x4x128xf32, #tpu.memory_space<vmem>>, vector<1x4x128xf32>
      %57 = vector.shape_cast %56 : vector<1x4x128xf32> to vector<4x128xf32>
      %58 = vector.shape_cast %55 : vector<4x128xf32> to vector<1x4x128xf32>
      tpu.vector_store %arg5[%c0_38, %c0_39, %c0_40], %58 {strides = array<i32>} : memref<1x4x128xf32, #tpu.memory_space<vmem>>, vector<1x4x128xf32>,
      %59 = vector.shape_cast %48 : vector<4x1xf32> to vector<4x1xf32>
      %60 = vector.broadcast %59 : vector<4x1xf32> to vector<4x128xf32>
      %c0_41 = arith.constant 0 : index
      %c0_42 = arith.constant 0 : index
      %c0_43 = arith.constant 0 : index
      %61 = vector.load %arg6[%c0_41, %c0_42, %c0_43] : memref<1x4x128xf32, #tpu.memory_space<vmem>>, vector<1x4x128xf32>
      %62 = vector.shape_cast %61 : vector<1x4x128xf32> to vector<4x128xf32>
      %63 = vector.shape_cast %60 : vector<4x128xf32> to vector<1x4x128xf32>
      tpu.vector_store %arg6[%c0_41, %c0_42, %c0_43], %63 {strides = array<i32>} : memref<1x4x128xf32, #tpu.memory_space<vmem>>, vector<1x4x128xf32>,
    } else {
    }
    return
  }
  func.func @transform_0(%arg0: i32, %arg1: i32) -> (i32, i32, i32) {
    %c0_i32 = arith.constant 0 : i32
    %c0_i32_0 = arith.constant 0 : i32
    return %arg0, %c0_i32, %arg1 : i32, i32, i32
  }
  func.func @transform_1(%arg0: i32, %arg1: i32) -> (i32, i32, i32) {
    %c0_i32 = arith.constant 0 : i32
    %c0_i32_0 = arith.constant 0 : i32
    return %arg0, %c0_i32, %arg1 : i32, i32, i32
  }
  func.func @transform_2(%arg0: i32, %arg1: i32) -> (i32, i32, i32) {
    %c0_i32 = arith.constant 0 : i32
    %c0_i32_0 = arith.constant 0 : i32
    %c0_i32_1 = arith.constant 0 : i32
    return %arg0, %c0_i32, %c0_i32_0 : i32, i32, i32
  }
  func.func @transform_3(%arg0: i32, %arg1: i32) -> (i32, i32, i32) {
    %c0_i32 = arith.constant 0 : i32
    %c0_i32_0 = arith.constant 0 : i32
    %c0_i32_1 = arith.constant 0 : i32
    return %arg0, %c0_i32, %c0_i32_0 : i32, i32, i32
  }
  func.func @transform_4(%arg0: i32, %arg1: i32) -> (i32, i32, i32) {
    %c0_i32 = arith.constant 0 : i32
    %c0_i32_0 = arith.constant 0 : i32
    %c0_i32_1 = arith.constant 0 : i32
    return %arg0, %c0_i32, %c0_i32_0 : i32, i32, i32
  }
}

</mosaic_0001>

<bundles_post_ra>
// kernel: tpu_custom_call.1
= control target key start
LH: loop header
LB: loop body
LE: loop exit
PB: predicated region body
PF: predicated region fallthrough
CT: control target
= control target key end

     0   :  { %10 = vsyncpa [#allocation6], 0  ;;  %s1233_s0 = inlined_call_operand.hbm [shape: f32[2,4,256], index: 0, kind: input, shape index: {}]   ;;  %s1234_s1 = inlined_call_operand.hbm [shape: f32[2,4,256], index: 1, kind: input, shape index: {}]   ;;  %s1235_s2 = inlined_call_operand.hbm [shape: f32[2,4,128], index: 2, kind: output, shape index: {0}]   ;;  %s1236_s3 = inlined_call_operand.hbm [shape: f32[2,4,128], index: 3, kind: output, shape index: {1}]   ;;  %s1237_s4 = inlined_call_operand.hbm [shape: f32[2,4,128], index: 4, kind: output, shape index: {2}]  }
   0x1   :  { %12 = vsyncpa [#allocation6 + $0x1], 0 }
   0x2   :  { %13 = vsyncpa [#allocation9], 0 }
   0x3   :  { %15 = vsyncpa [#allocation9 + $0x1], 0 }
   0x4   :  { %16 = vsyncpa [#allocation7], 0 }
   0x5   :  { %18 = vsyncpa [#allocation7 + $0x1], 0 }
   0x6   :  { %19 = vsyncpa [#allocation12], 0 }
   0x7   :  { %21 = vsyncpa [#allocation12 + $0x1], 0  ;;  %s923_s15 = smov 0   ;;  %s925_s16 = smov 0  }
   0x8   :  { %s927_s17 = smov 0   ;;  %s929_s18 = smov 0  }
   0x9   :  { %s931_s19 = smov 0   ;;  %s933_s20 = smov 0  }
   0xa LB: > { %s954_s21 = sadd.s32 4294967295, %s891_s20   ;;  %s1238_s22 = sadd.s32 4294967294, %s891_s20   ;;  %s891_s20 = sphi %s933_s20, %s27_s20   ;;  %s887_s19 = sphi %s931_s19, %s1259_s19   ;;  %s883_s18 = sphi %s929_s18, %s1258_s18   ;;  %s879_s17 = sphi %s927_s17, %s1257_s17   ;;  %s875_s16 = sphi %s925_s16, %s1256_s16   ;;  %s871_s15 = sphi %s923_s15, %s1255_s15  }
   0xb   : > { %s39_s23 = sadd.s32 1, %s887_s19  ;;  %s48_s24 = sadd.s32 1, %s879_s17 }
   0xc   : > { %p41_p0 = scmp.ge.s32.totalorder %s39_s23, 2  ;;  %p55_p1 = scmp.ne.s32.totalorder %s879_s17, %s875_s16 }
   0xd   : > { %p56_p2 = scmp.eq.s32.totalorder %s891_s20, 0  ;;  %p61_p3 = scmp.ne.s32.totalorder %s875_s16, %s871_s15 }
   0xe   : > { %s1261_s23 = smov (%p41_p0, %s39_s23), 0  ;;  %p62_p5 = scmp.eq.s32.totalorder %s954_s21, 0 }
   0xf   : > { %p966_p4 = por %p56_p2, %p55_p1  ;;  %s43_s26 = ssub.s32 %s887_s19, %s1261_s23 }
  0x10   : > { %p113_p6 = scmp.eq.s32.totalorder %s954_s21, 1  ;;  %p46_p7 = scmp.eq.s32.totalorder %s43_s26, 0 }
  0x11   : > { %p974_p8 = por %p62_p5, %p61_p3  ;;  %p119_p10 = scmp.eq.s32.totalorder %s1238_s22, 1 }
  0x12   : > { %p978_p9 = por %p113_p6, %p55_p1  ;;  %p631_p13 = scmp.lt.s32.totalorder %s891_s20, 2 }
  0x13   : > { %s1242_s27 = scalar_select %p974_p8, 1, 0 }
  0x14   : > { %s1243_s28 = scalar_select %p978_p9, 1, 0 }
  0x15   : > { %s985_s29 = scalar_select %p46_p7, %s879_s17, %s48_s24  }
  0x16   : > { %p987_p11 = por %p119_p10, %p61_p3  ;;  %s994_s5 = sand.u32 1, %s879_s17  }
  0x17   : > { %s582_s6 = sshll.u32 %s994_s5, 3  ;;  %s602_s7 = sshll.u32 %s887_s19, 7 }
  0x18   : > { %s1244_s30 = scalar_select %p987_p11, 1, 0 }
  0x19   : > { %s1003_s10 = scalar_lea.hbm %s1233_s0, %s602_s7  ;;  %s195_s11 = scalar_lea.vmem [#allocation5], %s582_s6 }
  0x1a   : > { %s205_s12 = sshll.u32 %s195_s11, 4  ;;  %p1011_p0 = pnand %p631_p13, %p966_p4  ;;  %s1007_s12 = int_to_ptr.vmem [resolvable:$true] %s205_s12 }
  0x1b   : > { %s192_s14 = scalar_lea.sflag [#allocation6], %s994_s5  ;;  %s685_s24 = scalar_lea.hbm %s1003_s10, 128 }
  0x1c   : > { %p686_p3 = scmp.ne.s32.totalorder %s1003_s10, %s685_s24  ;;  %p687_p5 = pneg %p1011_p0 }
  0x1d   : > { %s690_s25 = scalar_lea.hbm %s1233_s0, 256  ;;  %p691_p4 = scmp.lt.u32.totalorder %s1003_s10, %s1233_s0 }
  0x1e   : > { %p688_p6 = pnand %p687_p5, %p686_p3  ;;  %p692_p10 = scmp.lt.u32.totalorder %s690_s25, %s685_s24 }
  0x1f   : > { %p694_p12 = scmp.lt.u32.totalorder %s685_s24, %s1003_s10 }
  0x20   : > { %p689_p7 = pneg %p688_p6  ;;  %p693_p13 = por %p692_p10, %p691_p4 }
  0x22   : > { %p695_p1 = por %p694_p12, %p693_p13 }
  0x24   : > { %p696_p2 = pnand %p695_p1, %p689_p7 }
  0x26   : > { %699 = shalt.err (!%p696_p2)
}
  0x27   : > { %s700_s22 = scalar_lea.vmem %s1007_s12, 128  ;;  %s893_s26 = smov [#allocation5]  }
  0x28   : > { %p701_p3 = scmp.ne.s32.totalorder %s1007_s12, %s700_s22  ;;  %s705_s8 = sshll.u32 %s893_s26, 4  ;;  %s706_s8 = int_to_ptr.vmem [resolvable:$false] %s705_s8 }
  0x29   : > { %s707_s9 = scalar_lea.vmem %s706_s8, 256  ;;  %p708_p9 = scmp.lt.s32.totalorder %s1007_s12, %s706_s8 }
  0x2a   : > { %p703_p6 = pnand %p701_p3, %p687_p5  ;;  %p709_p4 = scmp.lt.s32.totalorder %s707_s9, %s700_s22 }
  0x2c   : > { %p704_p11 = pneg %p703_p6  ;;  %p710_p10 = por %p709_p4, %p708_p9 }
  0x2e   : > { %p711_p12 = pnand %p710_p10, %p704_p11 }
  0x30   : > { %714 = shalt.err (!%p711_p12)
}
  0x31   : > { %617 = dma.hbm_to_vmem [thread:$0]  (!%p1011_p0), %s1003_s10, 128, %s1007_s12, %s192_s14  }
  0x32   : > { %p1246_p1 = scmp.lt.s32.totalorder %s891_s20, 3  ;;  %p1247_p2 = scmp.ge.s32.totalorder %s891_s20, 1 }
  0x33   : > { %s1056_s11 = scalar_lea.hbm %s1234_s1, %s602_s7  ;;  %s216_s26 = scalar_lea.vmem [#allocation8], %s582_s6 }
  0x34   : > { %p1047_p7 = pnand %p1247_p2, %p1246_p1  ;;  %s226_s8 = sshll.u32 %s216_s26, 4  ;;  %s227_s8 = int_to_ptr.vmem [resolvable:$true] %s226_s8 }
  0x35   : > { %s213_s10 = scalar_lea.sflag [#allocation9], %s994_s5  ;;  %s715_s12 = scalar_lea.hbm %s1056_s11, 128 }
  0x36   : > { %s1248_s24 = scalar_select %p1047_p7, 1, 0 }
  0x37   : > { %p716_p9 = scmp.ne.s32.totalorder %s1056_s11, %s715_s12  ;;  %s720_s7 = scalar_lea.hbm %s1234_s1, 256 }
  0x38   : > { %p721_p3 = scmp.lt.u32.totalorder %s1056_s11, %s1234_s1  ;;  %p722_p6 = scmp.lt.u32.totalorder %s720_s7, %s715_s12 }
  0x39   : > { %p718_p11 = pnand %p716_p9, %p687_p5  ;;  %p724_p10 = scmp.lt.u32.totalorder %s715_s12, %s1056_s11 }
  0x3a   : > { %p723_p4 = por %p722_p6, %p721_p3 }
  0x3b   : > { %p719_p13 = pneg %p718_p11 }
  0x3c   : > { %p725_p12 = por %p724_p10, %p723_p4 }
  0x3e   : > { %p726_p1 = pnand %p725_p12, %p719_p13 }
  0x40   : > { %729 = shalt.err (!%p726_p1)
}
  0x41   : > { %s730_s5 = scalar_lea.vmem %s227_s8, 128  ;;  %s894_s6 = smov [#allocation8]  }
  0x42   : > { %p731_p2 = scmp.ne.s32.totalorder %s227_s8, %s730_s5  ;;  %s735_s26 = sshll.u32 %s894_s6, 4  ;;  %s736_s26 = int_to_ptr.vmem [resolvable:$false] %s735_s26 }
  0x43   : > { %s737_s14 = scalar_lea.vmem %s736_s26, 256  ;;  %p738_p8 = scmp.lt.s32.totalorder %s227_s8, %s736_s26 }
  0x44   : > { %p733_p9 = pnand %p731_p2, %p687_p5  ;;  %p739_p7 = scmp.lt.s32.totalorder %s737_s14, %s730_s5 }
  0x46   : > { %p734_p11 = pneg %p733_p9  ;;  %p740_p3 = por %p739_p7, %p738_p8 }
  0x48   : > { %p741_p6 = pnand %p740_p3, %p734_p11 }
  0x4a   : > { %744 = shalt.err (!%p741_p6)
}
  0x4b   : > { %620 = dma.hbm_to_vmem [thread:$0]  (!%p1011_p0), %s1056_s11, 128, %s227_s8, %s213_s10  }
  0x4c   : > { %p1249_p13 = scmp.ne.s32.totalorder %s1248_s24, 0 }
  0x4d   : > { %s1083_s12 = sand.u32 (!%p1249_p13), 1, %s875_s16   ;;  %p1250_p5 = scmp.ne.s32.totalorder (!%p1249_p13), %s1242_s27, 0 }
  0x4e   : > { %235 = sbr.rel (%p1249_p13) target bundleno = 303 (0x12f), region = 28  ;;  %s589_s9 = sshll.u32 (!%p1249_p13), %s1083_s12, 3 }
  0x4f   : > { %s238_s7 = scalar_lea.sflag (!%p1249_p13), [#allocation6], %s1083_s12  ;;  %s241_s22 = scalar_lea.vmem (!%p1249_p13), [#allocation5], %s589_s9 }
  0x55   : > { %854 = dma.done.wait (%p1250_p5), %s238_s7, 128  }
  0x56   : > { %856 = vsyncadd (%p1250_p5), %s238_s7, 4294967168  ;;  %s247_s13 = scalar_lea.sflag [#allocation9], %s1083_s12  ;;  %s250_s11 = scalar_lea.vmem [#allocation8], %s589_s9 }
  0x57   : > { %858 = dma.done.wait (%p1250_p5), %s247_s13, 128  }
  0x58   : > { %860 = vsyncadd (%p1250_p5), %s247_s13, 4294967168  ;;  %v299_v0 = vld [vmem:[%s241_s22] sm:$0xff]  ;;  %v300_v4 = vld [vmem:[%s250_s11] sm:$0xff]  ;;  %vm333_vm0 = vcmask 1043456   ;;  %s1103_s27 = sshll.u32 %s1083_s12, 2  ;;  %s365_s10 = sand.u32 1, %s954_s21  }
  0x59   : > { %v301_v1 = vmax.f32 %v299_v0, 1e-05  ;;  %681 = vlog2.f32 %v299_v0  ;;  %v306_v2 = vsub.f32 1.0, %v299_v0  ;;  %v311_v20 = vsub.f32 1.0, %v300_v4  ;;  %s282_s24 = scalar_lea.vmem [#allocation11], %s1103_s27  ;;  %s1108_s25 = sshll.u32 %s883_s18, 6 }
  0x5a   : > { %s397_s8 = sshll.u32 %s282_s24, 4  ;;  %s275_s5 = scalar_lea.vmem [#allocation10], %s1103_s27  ;;  %s1110_s8 = int_to_ptr.vmem [resolvable:$true] %s397_s8 }
  0x5b   : > { %v302_v3 = vmin.f32 %v301_v1, 0.99999  ;;  %683 = vlog2.f32 %v306_v2  ;;  %s384_s6 = sshll.u32 %s275_s5, 4  ;;  %s1119_s9 = scalar_lea.hbm %s1236_s3, %s1108_s25  ;;  %s1121_s6 = int_to_ptr.vmem [resolvable:$true] %s384_s6 }
  0x5c   : > { %s1123_s18 = scalar_lea.sflag [#allocation12], %s365_s10  ;;  %s745_s21 = scalar_lea.vmem %s1110_s8, 64 }
  0x5d   : > { %v320_v5 = vadd.f32 %v302_v3, %v300_v4  ;;  %v316_v6 = vmul.f32 %v302_v3, %v300_v4  ;;  %p746_p8 = scmp.ne.s32.totalorder %s1110_s8, %s745_s21  ;;  %p1251_p0 = scmp.ne.s32.totalorder %s1243_s28, 0 }
  0x5e   : > { %s895_s7 = smov [#allocation11]  }
  0x5f   : > { %v341_v7 = vcombine.high %v320_v5, %v320_v5  ;;  %v343_v8 = vsel %vm333_vm0, %v320_v5, 0.0  ;;  %v331_v9 = vcombine.high %v316_v6, %v316_v6  ;;  %v334_v11 = vsel %vm333_vm0, %v316_v6, 0.0  ;;  %p747_p7 = pnand %p746_p8, %p1251_p0  ;;  %s749_s22 = sshll.u32 %s895_s7, 4  ;;  %s750_s22 = int_to_ptr.vmem [resolvable:$false] %s749_s22 }
  0x60   : > { %s751_s13 = scalar_lea.vmem %s750_s22, 128  ;;  %p752_p10 = scmp.lt.s32.totalorder %s1110_s8, %s750_s22 }
  0x61   : > { %v344_v10 = vsel %vm333_vm0, %v341_v7, 0.0  ;;  %v335_v12 = vsel %vm333_vm0, %v331_v9, 0.0  ;;  %p748_p4 = pneg %p747_p7  ;;  %p753_p12 = scmp.lt.s32.totalorder %s751_s13, %s745_s21 }
  0x62   : > { %v345_v13 = vadd.f32 %v344_v10, %v343_v8  ;;  %v336_v16 = vadd.f32 %v335_v12, %v334_v11 }
  0x63   : > { %v682_v14 = vpop.eup %681  ;;  %p754_p1 = por %p753_p12, %p752_p10 }
  0x64   : > { %346 = vadd.xlane.f32.xlu0 %v345_v13  ;;  %v304_v15 = vmul.f32 0.6931472, %v682_v14 }
  0x65   : > { %v684_v17 = vpop.eup %683  ;;  %p755_p2 = pnand %p754_p1, %p748_p4 }
  0x66   : > { %v305_v18 = vmax.f32 %v304_v15, -100.0  ;;  %v308_v19 = vmul.f32 0.6931472, %v684_v17 }
  0x68   : > { %v309_v21 = vmax.f32 %v308_v19, -100.0  ;;  %v310_v22 = vmul.f32 %v305_v18, %v300_v4  ;;  %337 = vadd.xlane.f32.xlu0 %v336_v16 }
  0x6a   : > { %v312_v23 = vmul.f32 %v311_v20, %v309_v21 }
  0x6c   : > { %v313_v24 = vadd.f32 %v312_v23, %v310_v22 }
  0x6e   : > { %v314_v25 = vsub.f32 0.0, %v313_v24 }
  0x70   : > { %v350_v26 = vcombine.high %v314_v25, %v314_v25  ;;  %v352_v27 = vsel %vm333_vm0, %v314_v25, 0.0 }
  0x72   : > { %v353_v28 = vsel %vm333_vm0, %v350_v26, 0.0 }
  0x73   : > { %v354_v29 = vadd.f32 %v353_v28, %v352_v27 }
  0x75   : > { %355 = vadd.xlane.f32.xlu1 %v354_v29 }
  0xf1   : > { %v347_v30 = vpop.xlane.xlu0 %346 }
  0xf2   : > { %358 = vst [vmem:[%s282_s24] sm:$0xf] %v347_v30 }
  0xf3   : > { %758 = shalt.err (!%p755_p2)
}
  0xf4   : > { %s759_s11 = scalar_lea.hbm %s1119_s9, 64  ;;  %s763_s26 = scalar_lea.hbm %s1236_s3, 128 }
  0xf5   : > { %p760_p9 = scmp.ne.s32.totalorder %s1119_s9, %s759_s11  ;;  %p764_p6 = scmp.lt.u32.totalorder %s1119_s9, %s1236_s3 }
  0xf6   : > { %p765_p13 = scmp.lt.u32.totalorder %s763_s26, %s759_s11  ;;  %p767_p8 = scmp.lt.u32.totalorder %s759_s11, %s1119_s9 }
  0xf7   : > { %p761_p11 = pnand %p760_p9, %p1251_p0 }
  0xf8   : > { %p766_p5 = por %p765_p13, %p764_p6 }
  0xf9   : > { %p762_p3 = pneg %p761_p11 }
  0xfa   : > { %p768_p7 = por %p767_p8, %p766_p5 }
  0xfc   : > { %p769_p4 = pnand %p768_p7, %p762_p3 }
  0xfe   : > { %772 = shalt.err (!%p769_p4)
}
  0xff   : > { %609 = dma.vmem_to_hbm [thread:$0]  (%p1251_p0), %s1110_s8, 64, %s1119_s9, %s1123_s18   ;;  %v338_v31 = vpop.xlane.xlu0 %337 }
 0x100   : > { %s1151_s13 = scalar_lea.hbm %s1235_s2, %s1108_s25  ;;  %357 = vst [vmem:[%s275_s5] sm:$0xf] %v338_v31  ;;  %s361_s11 = scalar_lea.sflag [#allocation7], %s1083_s12 }
 0x101   : > { %s773_s24 = scalar_lea.vmem %s1121_s6, 64  ;;  %s896_s10 = smov [#allocation10]  }
 0x102   : > { %p774_p10 = scmp.ne.s32.totalorder %s1121_s6, %s773_s24  ;;  %s777_s26 = sshll.u32 %s896_s10, 4  ;;  %s778_s26 = int_to_ptr.vmem [resolvable:$false] %s777_s26 }
 0x103   : > { %s779_s14 = scalar_lea.vmem %s778_s26, 128  ;;  %p780_p2 = scmp.lt.s32.totalorder %s1121_s6, %s778_s26 }
 0x104   : > { %p775_p12 = pnand %p774_p10, %p1251_p0  ;;  %p781_p9 = scmp.lt.s32.totalorder %s779_s14, %s773_s24 }
 0x106   : > { %p776_p1 = pneg %p775_p12  ;;  %p782_p11 = por %p781_p9, %p780_p2 }
 0x108   : > { %p783_p3 = pnand %p782_p11, %p776_p1 }
 0x10a   : > { %786 = shalt.err (!%p783_p3)
}
 0x10b   : > { %s787_s12 = scalar_lea.hbm %s1151_s13, 64  ;;  %s791_s9 = scalar_lea.hbm %s1235_s2, 128 }
 0x10c   : > { %p788_p6 = scmp.ne.s32.totalorder %s1151_s13, %s787_s12  ;;  %p792_p8 = scmp.lt.u32.totalorder %s1151_s13, %s1235_s2 }
 0x10d   : > { %p793_p7 = scmp.lt.u32.totalorder %s791_s9, %s787_s12  ;;  %p795_p10 = scmp.lt.u32.totalorder %s787_s12, %s1151_s13 }
 0x10e   : > { %p789_p13 = pnand %p788_p6, %p1251_p0 }
 0x10f   : > { %p794_p4 = por %p793_p7, %p792_p8 }
 0x110   : > { %p790_p5 = pneg %p789_p13 }
 0x111   : > { %p796_p12 = por %p795_p10, %p794_p4 }
 0x113   : > { %p797_p1 = pnand %p796_p12, %p790_p5 }
 0x115   : > { %800 = shalt.err (!%p797_p1)
}
 0x116   : > { %608 = dma.vmem_to_hbm [thread:$0]  (%p1251_p0), %s1121_s6, 64, %s1151_s13, %s361_s11   ;;  %v356_v32 = vpop.xlane.xlu1 %355 }
 0x117   : > { %s289_s22 = scalar_lea.vmem [#allocation13], %s1103_s27  ;;  %s1184_s14 = scalar_lea.hbm %s1237_s4, %s1108_s25 }
 0x118   : > { %s410_s24 = sshll.u32 %s289_s22, 4  ;;  %359 = vst [vmem:[%s289_s22] sm:$0xf] %v356_v32  ;;  %s897_s6 = smov [#allocation13]   ;;  %s1178_s24 = int_to_ptr.vmem [resolvable:$true] %s410_s24 }
 0x119   : > { %s801_s12 = scalar_lea.vmem %s1178_s24, 64  ;;  %s805_s27 = sshll.u32 %s897_s6, 4  ;;  %s806_s27 = int_to_ptr.vmem [resolvable:$false] %s805_s27 }
 0x11a   : > { %p802_p2 = scmp.ne.s32.totalorder %s1178_s24, %s801_s12  ;;  %s807_s13 = scalar_lea.vmem %s806_s27, 128 }
 0x11b   : > { %p808_p3 = scmp.lt.s32.totalorder %s1178_s24, %s806_s27  ;;  %p809_p6 = scmp.lt.s32.totalorder %s807_s13, %s801_s12 }
 0x11c   : > { %p803_p9 = pnand %p802_p2, %p1251_p0 }
 0x11d   : > { %p810_p13 = por %p809_p6, %p808_p3 }
 0x11e   : > { %p804_p11 = pneg %p803_p9 }
 0x120   : > { %p811_p5 = pnand %p810_p13, %p804_p11 }
 0x122   : > { %814 = shalt.err (!%p811_p5)
}
 0x123   : > { %s815_s25 = scalar_lea.hbm %s1184_s14, 64  ;;  %s819_s5 = scalar_lea.hbm %s1237_s4, 128 }
 0x124   : > { %p816_p8 = scmp.ne.s32.totalorder %s1184_s14, %s815_s25  ;;  %p820_p10 = scmp.lt.u32.totalorder %s1184_s14, %s1237_s4 }
 0x125   : > { %p821_p12 = scmp.lt.u32.totalorder %s819_s5, %s815_s25  ;;  %p823_p2 = scmp.lt.u32.totalorder %s815_s25, %s1184_s14 }
 0x126   : > { %p817_p7 = pnand %p816_p8, %p1251_p0 }
 0x127   : > { %p822_p1 = por %p821_p12, %p820_p10 }
 0x128   : > { %p818_p4 = pneg %p817_p7 }
 0x129   : > { %p824_p9 = por %p823_p2, %p822_p1 }
 0x12b   : > { %p825_p11 = pnand %p824_p9, %p818_p4 }
 0x12d   : > { %828 = shalt.err (!%p825_p11)
}
 0x12e   : > { %610 = dma.vmem_to_hbm [thread:$0]  (%p1251_p0), %s1178_s24, 64, %s1184_s14, %s1123_s18  }
 0x12f PF: > { %s422_s21 = sand.u32 1, %s871_s15   ;;  %p1252_p3 = scmp.ne.s32.totalorder %s1244_s30, 0 }
 0x130   : > { %p1253_p6 = scmp.ge.s32.totalorder %s891_s20, 2  ;;  %s423_s22 = scalar_lea.sflag [#allocation7], %s422_s21 }
 0x132   : > { %p622_p13 = pnand %p1253_p6, %p1252_p3 }
 0x134   : > { %862 = dma.done.wait (!%p622_p13), %s423_s22, 64  }
 0x135   : > { %864 = vsyncadd (!%p622_p13), %s423_s22, 4294967232  ;;  %s1254_s10 = sadd.s32 4294967294, %s891_s20  }
 0x136   : > { %s431_s26 = sand.u32 1, %s1254_s10  }
 0x137   : > { %s432_s12 = scalar_lea.sflag [#allocation12], %s431_s26 }
 0x138   : > { %866 = dma.done.wait (!%p622_p13), %s432_s12, 128  }
 0x139   : > { %868 = vsyncadd (!%p622_p13), %s432_s12, 4294967168  ;;  %s27_s20 = sadd.s32 1, %s891_s20   ;;  %s1255_s15 = smov %s875_s16 }
 0x13a   : > { %p24_p0 = scmp.ge.s32.totalorder %s27_s20, 4   ;;  %s1256_s16 = smov %s879_s17 }
 0x13b   : > { %s1257_s17 = smov %s985_s29  ;;  %s1258_s18 = smov %s887_s19 }
 0x13c   : > { %s1259_s19 = smov %s1261_s23  ;;  %26 = sbr.rel (!%p24_p0) target bundleno = 10 (0xa), region = 126 }
 0x143   :  { %446 = vsyncpa [#allocation6], 1 }
 0x144   :  { %448 = vsyncpa [#allocation6 + $0x1], 1 }
 0x145   :  { %449 = vsyncpa [#allocation9], 1 }
 0x146   :  { %451 = vsyncpa [#allocation9 + $0x1], 1 }
 0x147   :  { %452 = vsyncpa [#allocation7], 1 }
 0x148   :  { %454 = vsyncpa [#allocation7 + $0x1], 1 }
 0x149   :  { %455 = vsyncpa [#allocation12], 1 }
 0x14a   :  { %457 = vsyncpa [#allocation12 + $0x1], 1 }

</bundles_post_ra>
